<compile_context>
chip_gen: v5e
topology: v5e:2x2
jax: 0.10.0
libtpu: 0.0.40
codegen_flags: <defaults>
</compile_context>

<pallas_src>
import functools

import jax
import jax.numpy as jnp
from jax.experimental import pallas as pl
from jax.experimental.pallas import tpu as pltpu


def _round_up(x, m):
    return -(-x // m) * m


def _roll_lanes(x, shift):
    """pltpu.roll along the last (lane) axis with a normalized positive shift."""
    n = x.shape[-1]
    return pltpu.roll(x, shift % n, axis=1)


def teng_kernel(W, img_ref, mask_ref, border_ref, out_ref):
    # img_ref:    (TN, H*W)    image planes, flattened row-major (lane dense)
    # mask_ref:   (TN, 2*H*W)  mask logits, channel 0 then channel 1
    # border_ref: (1, H*W)     1.0 on interior pixels (1<=r<=H-2, 1<=c<=W-2)
    # out_ref:    (1, TN)      per-image scores
    HW = img_ref.shape[-1]

    img = img_ref[...].astype(jnp.float32)          # (TN, HW)
    border = border_ref[...]                        # (1, HW), {0.0, 1.0}

    # Channel-1 of a 2-way softmax == sigmoid(m1 - m0); tanh form is
    # numerically stable and runs on the (otherwise idle) EUP.
    m0 = mask_ref[:, 0:HW].astype(jnp.float32)
    m1 = mask_ref[:, HW:2 * HW].astype(jnp.float32)
    m = (0.5 * (jnp.tanh(0.5 * (m1 - m0)) + 1.0)) * border   # 0 outside interior

    # Separable 3x3 Sobel (valid, cross-correlation like nn.Conv2d) on the
    # lane-dense flattened image using XLU rolls.  Wrap-around values only
    # touch non-interior pixels, which the border mask zeroes; the score is
    # invariant to the roll sign convention (Gx/Gy are odd under a 180-degree
    # stencil flip, and gx^2 + gy^2 is what we sum).
    up = _roll_lanes(img, W)                        # row r-1 brought to row r
    dn = _roll_lanes(img, -W)                       # row r+1 brought to row r
    t_s = up + 2.0 * img + dn                       # vertical [1, 2, 1]
    t_d = up - dn                                   # vertical [1, 0, -1]
    gx = _roll_lanes(t_s, 1) - _roll_lanes(t_s, -1)
    gy = _roll_lanes(t_d, 1) + 2.0 * t_d + _roll_lanes(t_d, -1)

    x = gx * gx + gy * gy                           # squared gradient magnitude

    num = jnp.sum(x * m, axis=1)                    # (TN,)
    den = jnp.sum(m, axis=1)                        # (TN,)
    # 65025 = 255**2: the per-pixel *255 hoisted out of the conv (exact).
    # Division is unguarded to match the reference (den == 0 only for a fully
    # degenerate soft mask).
    out_ref[0, :] = (65025.0 * num) / den


def _vmem_capacity_bytes():
    try:
        return int(pltpu.get_tpu_info().vmem_capacity_bytes)
    except Exception:
        return 64 * 1024 * 1024      # assume smallest (v7x per-core) VMEM


def _canon_dtype(x):
    # Accept bf16 inputs as-is (half the HBM bytes on a bandwidth-bound
    # kernel); everything else goes to f32.  The kernel upcasts internally.
    return x if x.dtype == jnp.bfloat16 else x.astype(jnp.float32)


def teng_forward(img, mask):
    """img: (B, F, 1, H, W); mask: (B, F, 2, H, W) -> (B, F) float32 scores."""
    B, F, C, H, W = img.shape
    if C != 1:
        raise ValueError("Teng expects single-channel images")
    if mask.shape != (B, F, 2, H, W):
        raise ValueError("mask must have shape (B, F, 2, H, W)")
    if H < 3 or W < 3:
        raise ValueError("Teng needs H, W >= 3 for a valid 3x3 Sobel")

    N = B * F
    HW = H * W

    img2 = _canon_dtype(img.reshape(N, HW))            # free reshape
    mask2 = _canon_dtype(mask.reshape(N, 2 * HW))      # free reshape

    # ---- generation-aware block sizing / VMEM budget -----------------------
    vmem_cap = _vmem_capacity_bytes()
    if vmem_cap >= 100 * 1024 * 1024:        # v5e / v6e: 128 MiB physical
        vmem_cap_limit = 96 * 1024 * 1024
        target_input_block = 12 * 1024 * 1024
    else:                                    # v7x: 64 MiB per TensorCore
        vmem_cap_limit = 56 * 1024 * 1024
        target_input_block = 7 * 1024 * 1024

    lane_hw = _round_up(HW, 128)
    bytes_per_image_in = HW * img2.dtype.itemsize + 2 * HW * mask2.dtype.itemsize
    # VMEM per image: double-buffered inputs (img + 2 mask planes, lane padded,
    # f32 upper bound) + ~8 f32 plane-sized in-kernel temporaries
    # (rolled imgs, t_s, t_d, gx, gy, x, m, ...).
    per_image_vmem = (2 * 3 + 8) * lane_hw * 4

    tn = min(N,
             max(1, target_input_block // bytes_per_image_in),
             max(1, (vmem_cap_limit - (8 << 20)) // per_image_vmem))
    if N >= 16:
        tn = min(tn, -(-N // 2))      # keep >= 2 grid steps (megacore sharding)
    if tn >= 8:
        tn = (tn // 8) * 8            # sublane-aligned image blocks
    elif tn >= N:
        tn = N                        # whole (small) batch in one block
    G = -(-N // tn)
    N_pad = G * tn

    if N_pad > N:
        # zero padding: padded images -> num = 0, den = 0.5*(H-2)*(W-2) > 0,
        # so scores stay finite; they are sliced off below.
        img2 = jnp.pad(img2, ((0, N_pad - N), (0, 0)))
        mask2 = jnp.pad(mask2, ((0, N_pad - N), (0, 0)))

    # Interior ("border") mask: 1.0 exactly on pixels with a full 3x3 window.
    rows_ok = (jnp.arange(H) >= 1) & (jnp.arange(H) <= H - 2)
    cols_ok = (jnp.arange(W) >= 1) & (jnp.arange(W) <= W - 2)
    border = (rows_ok[:, None] & cols_ok[None, :]).astype(jnp.float32).reshape(1, HW)

    tn_pad = _round_up(tn, 8)
    needed = (2 * 3 + 8) * tn_pad * lane_hw * 4 + (4 << 20)
    vmem_limit = int(min(vmem_cap_limit, max(32 << 20, needed)))

    out = pl.pallas_call(
        functools.partial(teng_kernel, W),
        out_shape=jax.ShapeDtypeStruct((G, tn), jnp.float32),
        grid=(G,),
        in_specs=[
            pl.BlockSpec((tn, HW), lambda n: (n, 0)),
            pl.BlockSpec((tn, 2 * HW), lambda n: (n, 0)),
            pl.BlockSpec((1, HW), lambda n: (0, 0)),
        ],
        out_specs=pl.BlockSpec((1, tn), lambda n: (n, 0)),
        compiler_params=pltpu.CompilerParams(
            dimension_semantics=("parallel",),
            vmem_limit_bytes=vmem_limit,
        ),
    )(img2, mask2, border)

    return out.reshape(N_pad)[:N].reshape(B, F)


def teng_reference(img, mask):
    """Pure-JAX reference mirroring the PyTorch forward."""
    B, F, C, H, W = img.shape
    im = img.reshape(-1, H, W).astype(jnp.float32) * 255.0
    mk = jax.nn.softmax(mask.reshape(-1, 2, H, W).astype(jnp.float32), axis=1)
    mk = mk[:, 1, 1:-1, 1:-1]
    a = im[:, :-2, :-2]; b = im[:, :-2, 1:-1]; c = im[:, :-2, 2:]
    d = im[:, 1:-1, :-2];                      f = im[:, 1:-1, 2:]
    g = im[:, 2:, :-2];  h = im[:, 2:, 1:-1];  i2 = im[:, 2:, 2:]
    gx = a - c + 2.0 * d - 2.0 * f + g - i2
    gy = a + 2.0 * b + c - g - 2.0 * h - i2
    x = gx * gx + gy * gy
    score = (x * mk).sum((-1, -2)) / mk.sum((-1, -2))
    return score.reshape(B, F)


if __name__ == "__main__":
    key = jax.random.PRNGKey(0)
    k_img, k_mask = jax.random.split(key)

    B, F, C, H, W = 2, 2, 1, 16, 16
    img = jax.random.uniform(k_img, (B, F, C, H, W), dtype=jnp.float32)
    mask = jax.random.normal(k_mask, (B, F, 2, H, W), dtype=jnp.float32)

    score = teng_forward(img, mask)
    jax.block_until_ready(score)

    ref = teng_reference(img, mask)
    assert score.shape == (B, F)
    assert jnp.allclose(score, ref, rtol=1e-4, atol=1e-2), (score, ref)

    print("KERNEL_OK")
</pallas_src>

<mosaic_0001>
module attributes {stable_mosaic.version = 11 : i64} {
  func.func @teng_kernel(%arg0: i32, %arg1: memref<4x256xf32, #tpu.memory_space<vmem>>, %arg2: memref<4x512xf32, #tpu.memory_space<vmem>>, %arg3: memref<1x256xf32, #tpu.memory_space<vmem>>, %arg4: memref<1x4xf32, #tpu.memory_space<vmem>>) attributes {dimension_semantics = [#tpu.dimension_semantics<parallel>], iteration_bounds = array<i64: 1>, scalar_prefetch = 0 : i64, scratch_operands = 0 : i64, tpu.core_type = #tpu.core_type<tc>, window_params = [{transform_indices = @transform_0, window_bounds = array<i64: 4, 256>}, {transform_indices = @transform_1, window_bounds = array<i64: 4, 512>}, {pipeline_mode = #tpu.pipeline_mode<synchronous>, transform_indices = @transform_2, window_bounds = array<i64: 1, 256>}, {transform_indices = @transform_3, window_bounds = array<i64: 1, 4>}]} {
    %c0 = arith.constant 0 : index
    %c0_0 = arith.constant 0 : index
    %0 = vector.load %arg1[%c0, %c0_0] : memref<4x256xf32, #tpu.memory_space<vmem>>, vector<4x256xf32>
    %c0_1 = arith.constant 0 : index
    %c0_2 = arith.constant 0 : index
    %1 = vector.load %arg3[%c0_1, %c0_2] : memref<1x256xf32, #tpu.memory_space<vmem>>, vector<1x256xf32>
    %c0_3 = arith.constant 0 : index
    %c0_4 = arith.constant 0 : index
    %2 = vector.load %arg2[%c0_3, %c0_4] : memref<4x512xf32, #tpu.memory_space<vmem>>, vector<4x256xf32>
    %c0_5 = arith.constant 0 : index
    %c256 = arith.constant 256 : index
    %3 = vector.load %arg2[%c0_5, %c256] : memref<4x512xf32, #tpu.memory_space<vmem>>, vector<4x256xf32>
    %4 = arith.subf %3, %2 : vector<4x256xf32>
    %cst = arith.constant 5.000000e-01 : f32
    %5 = vector.broadcast %cst : f32 to vector<4x256xf32>
    %6 = arith.mulf %5, %4 : vector<4x256xf32>
    %7 = math.tanh %6 : vector<4x256xf32>
    %cst_6 = arith.constant 1.000000e+00 : f32
    %8 = vector.broadcast %cst_6 : f32 to vector<4x256xf32>
    %9 = arith.addf %7, %8 : vector<4x256xf32>
    %cst_7 = arith.constant 5.000000e-01 : f32
    %10 = vector.broadcast %cst_7 : f32 to vector<4x256xf32>
    %11 = arith.mulf %10, %9 : vector<4x256xf32>
    %12 = vector.broadcast %1 : vector<1x256xf32> to vector<4x256xf32>
    %13 = arith.mulf %11, %12 : vector<4x256xf32>
    %c16_i32 = arith.constant 16 : i32
    %14 = tpu.dynamic_rotate %0 by %c16_i32 dim 1 : vector<4x256xf32>, i32 -> vector<4x256xf32>
    %c240_i32 = arith.constant 240 : i32
    %15 = tpu.dynamic_rotate %0 by %c240_i32 dim 1 : vector<4x256xf32>, i32 -> vector<4x256xf32>
    %cst_8 = arith.constant 2.000000e+00 : f32
    %16 = vector.broadcast %cst_8 : f32 to vector<4x256xf32>
    %17 = arith.mulf %16, %0 : vector<4x256xf32>
    %18 = arith.addf %14, %17 : vector<4x256xf32>
    %19 = arith.addf %18, %15 : vector<4x256xf32>
    %20 = arith.subf %14, %15 : vector<4x256xf32>
    %c1_i32 = arith.constant 1 : i32
    %21 = tpu.dynamic_rotate %19 by %c1_i32 dim 1 : vector<4x256xf32>, i32 -> vector<4x256xf32>
    %c255_i32 = arith.constant 255 : i32
    %22 = tpu.dynamic_rotate %19 by %c255_i32 dim 1 : vector<4x256xf32>, i32 -> vector<4x256xf32>
    %23 = arith.subf %21, %22 : vector<4x256xf32>
    %c1_i32_9 = arith.constant 1 : i32
    %24 = tpu.dynamic_rotate %20 by %c1_i32_9 dim 1 : vector<4x256xf32>, i32 -> vector<4x256xf32>
    %cst_10 = arith.constant 2.000000e+00 : f32
    %25 = vector.broadcast %cst_10 : f32 to vector<4x256xf32>
    %26 = arith.mulf %25, %20 : vector<4x256xf32>
    %27 = arith.addf %24, %26 : vector<4x256xf32>
    %c255_i32_11 = arith.constant 255 : i32
    %28 = tpu.dynamic_rotate %20 by %c255_i32_11 dim 1 : vector<4x256xf32>, i32 -> vector<4x256xf32>
    %29 = arith.addf %27, %28 : vector<4x256xf32>
    %30 = arith.mulf %23, %23 : vector<4x256xf32>
    %31 = arith.mulf %29, %29 : vector<4x256xf32>
    %32 = arith.addf %30, %31 : vector<4x256xf32>
    %33 = arith.mulf %32, %13 : vector<4x256xf32>
    %cst_12 = arith.constant dense<0.000000e+00> : vector<4xf32>
    %34 = vector.multi_reduction <add>, %33, %cst_12 [1] : vector<4x256xf32> to vector<4xf32>
    %cst_13 = arith.constant dense<0.000000e+00> : vector<4xf32>
    %35 = vector.multi_reduction <add>, %13, %cst_13 [1] : vector<4x256xf32> to vector<4xf32>
    %cst_14 = arith.constant 6.502500e+04 : f32
    %36 = vector.broadcast %cst_14 : f32 to vector<4xf32>
    %37 = arith.mulf %36, %34 : vector<4xf32>
    %38 = arith.divf %37, %35 : vector<4xf32>
    %c0_15 = arith.constant 0 : index
    %c0_16 = arith.constant 0 : index
    %39 = vector.load %arg4[%c0_15, %c0_16] : memref<1x4xf32, #tpu.memory_space<vmem>>, vector<1x4xf32>
    %40 = vector.shape_cast %39 : vector<1x4xf32> to vector<4xf32>
    %41 = vector.shape_cast %38 : vector<4xf32> to vector<1x4xf32>
    tpu.vector_store %arg4[%c0_15, %c0_16], %41 {strides = array<i32>} : memref<1x4xf32, #tpu.memory_space<vmem>>, vector<1x4xf32>,
    return
  }
  func.func @transform_0(%arg0: i32) -> (i32, i32) {
    %c0_i32 = arith.constant 0 : i32
    %c0_i32_0 = arith.constant 0 : i32
    return %arg0, %c0_i32 : i32, i32
  }
  func.func @transform_1(%arg0: i32) -> (i32, i32) {
    %c0_i32 = arith.constant 0 : i32
    %c0_i32_0 = arith.constant 0 : i32
    return %arg0, %c0_i32 : i32, i32
  }
  func.func @transform_2(%arg0: i32) -> (i32, i32) {
    %c0_i32 = arith.constant 0 : i32
    %c0_i32_0 = arith.constant 0 : i32
    %c0_i32_1 = arith.constant 0 : i32
    return %c0_i32, %c0_i32_0 : i32, i32
  }
  func.func @transform_3(%arg0: i32) -> (i32, i32) {
    %c0_i32 = arith.constant 0 : i32
    %c0_i32_0 = arith.constant 0 : i32
    return %arg0, %c0_i32 : i32, i32
  }
}

</mosaic_0001>

<bundles_post_ra>
// kernel: tpu_custom_call.1
= control target key start
LH: loop header
LB: loop body
LE: loop exit
PB: predicated region body
PF: predicated region fallthrough
CT: control target
= control target key end

     0   :  { %8 = vsyncpa [#allocation3], 0  ;;  %s381_s0 = inlined_call_operand.hbm [shape: f32[4,256], index: 0, kind: input, shape index: {}]   ;;  %s382_s1 = inlined_call_operand.hbm [shape: f32[4,512], index: 1, kind: input, shape index: {}]   ;;  %s383_s2 = inlined_call_operand.hbm [shape: f32[1,256], index: 2, kind: input, shape index: {}]   ;;  %s384_s3 = inlined_call_operand.hbm [shape: f32[1,4], index: 3, kind: output, shape index: {}]  }
   0x1   :  { %9 = vsyncpa [#allocation6], 0  ;;  %s27_s14 = sshll.u32 %s382_s1, 4  ;;  %s28_s14 = int_to_ptr.hbm [resolvable:$true] %s27_s14 }
   0x2   :  { %10 = vsyncpa [#allocation4], 0  ;;  %s329_s15 = smov [#allocation5]   ;;  %s16_s19 = sshll.u32 %s381_s0, 4  ;;  %s17_s19 = int_to_ptr.hbm [resolvable:$true] %s16_s19 }
   0x3   :  { %s29_s16 = sshll.u32 %s329_s15, 4  ;;  %s330_s20 = smov [#allocation2]   ;;  %s30_s16 = int_to_ptr.vmem [resolvable:$true] %s29_s16 }
   0x4   :  { %32 = dma.hbm_to_vmem [thread:$0]  %s28_s14, 256, %s30_s16, [#allocation6]  }
   0x5   :  { %s18_s21 = sshll.u32 %s330_s20, 4  ;;  %s38_s24 = sshll.u32 %s383_s2, 4  ;;  %s19_s21 = int_to_ptr.vmem [resolvable:$true] %s18_s21  ;;  %s39_s24 = int_to_ptr.hbm [resolvable:$true] %s38_s24 }
   0x6   :  { %21 = dma.hbm_to_vmem [thread:$0]  %s17_s19, 128, %s19_s21, [#allocation3]  }
   0x7   :  { %s331_s1 = smov [#allocation7]  }
   0x8   :  { %s40_s25 = sshll.u32 %s331_s1, 4  ;;  %s41_s25 = int_to_ptr.vmem [resolvable:$true] %s40_s25 }
   0x9   :  { %43 = dma.hbm_to_vmem [thread:$0]  %s39_s24, 32, %s41_s25, [#allocation6]  }
   0xa   :  { %323 = dma.done.wait [#allocation3], 128  }
   0xb   :  { %324 = vsyncadd [#allocation3], 4294967168 }
   0xc   :  { %325 = dma.done.wait [#allocation6], 288  }
   0xd   :  { %326 = vsyncadd [#allocation6], 4294967008  ;;  %v56_v0 = vld [vmem:[#allocation2] sm:$0xff]  ;;  %s332_s0 = smov 16   ;;  %s333_s2 = smov 112   ;;  %v83_v7 = vlaneseq  ;;  %v58_v24 = vld [vmem:[#allocation5] sm:$0xff] }
   0xe   :  { %74 = vst [vmem:[#allocation1] ss:$2 sm:$0xff] %v56_v0  ;;  %v100_v3 = vmul.f32 2.0, %v56_v0  ;;  %s334_s26 = smov 1   ;;  %s335_s27 = smov 127   ;;  %v59_v25 = vld [vmem:[#allocation5 + $0x8] sm:$0xff] }
   0xf   :  { %v366_v8 = vand.u32 127, %v83_v7  ;;  %v60_v26 = vsub.f32 %v59_v25, %v58_v24  ;;  %v57_v28 = vld [vmem:[#allocation7] sm:$0x3]  ;;  %vm69_vm2 = vcmask 1043456   ;;  %s336_s28 = smov [#allocation8]   ;;  %s204_s5 = sshll.u32 %s384_s3, 4  ;;  %s205_s5 = int_to_ptr.hbm [resolvable:$true] %s204_s5 }
  0x10   :  { %v67_v30 = vperm.slane %v57_v28, 1  ;;  %v66_v32 = vperm.slane %v57_v28, 0  ;;  %s202_s29 = sshll.u32 %s336_s28, 4  ;;  %vm195_vm9 = vcmask 24576   ;;  %s203_s29 = int_to_ptr.vmem [resolvable:$true] %s202_s29 }
  0x11   :  { %vm85_vm0 = vcmp.lt.s32.totalorder %v366_v8, 16  ;;  %vm97_vm1 = vcmp.lt.s32.totalorder %v366_v8, 112  ;;  %v61_v27 = vmul.f32 0.5, %v60_v26  ;;  %vm117_vm3 = vcmp.lt.s32.totalorder %v366_v8, 1 }
  0x12   :  { %v68_v33 = vrot.slane %v67_v30, 4  ;;  %vm124_vm4 = vcmp.lt.s32.totalorder %v366_v8, 127 }
  0x13   :  { %223 = vtanh.f32 %v61_v27 }
  0x14   :  { %v70_v35 = vsel %vm69_vm2, %v66_v32, %v68_v33 }
  0x15   :  { %v75_v1 = vld.sshfl [vmem:[#allocation1] sm:$0xff pattern:$0x75316420]  ;;  %v76_v2 = vld.sshfl [vmem:[#allocation1 + $0x8] sm:$0xff pattern:$0x75316420] }
  0x16   :  { %79 = vrot.lane.b32.xlu0 %v75_v1, %s332_s0  ;;  %88 = vst [vmem:[#allocation1] ss:$2 sm:$0xff] %v56_v0 }
  0x19   :  { %v224_v29 = vpop.eup %223 }
  0x1a   :  { %v63_v31 = vadd.f32 1.0, %v224_v29 }
  0x1c   :  { %v64_v34 = vmul.f32 0.5, %v63_v31 }
  0x1d   :  { %v89_v4 = vld.sshfl [vmem:[#allocation1] sm:$0xff pattern:$0x75316420]  ;;  %v90_v5 = vld.sshfl [vmem:[#allocation1 + $0x8] sm:$0xff pattern:$0x75316420] }
  0x1e   :  { %81 = vrot.lane.b32.xlu0 %v76_v2, %s332_s0  ;;  %93 = vrot.lane.b32.xlu1 %v89_v4, %s333_s2  ;;  %102 = vst [vmem:[#allocation1] ss:$2 sm:$0xff] %v100_v3  ;;  %v72_v36 = vmul.f32 %v70_v35, %v64_v34 }
  0x25   :  { %v103_v13 = vld.sshfl [vmem:[#allocation1] sm:$0xff pattern:$0x75316420]  ;;  %v104_v14 = vld.sshfl [vmem:[#allocation1 + $0x8] sm:$0xff pattern:$0x75316420] }
  0x26   :  { %95 = vrot.lane.b32.xlu1 %v90_v5, %s333_s2  ;;  %154 = vst [vmem:[#allocation1] ss:$2 sm:$0xff] %v72_v36 }
  0x2d   :  { %v155_v37 = vld.sshfl [vmem:[#allocation1] sm:$0xff pattern:$0x75316420]  ;;  %v156_v38 = vld.sshfl [vmem:[#allocation1 + $0x8] sm:$0xff pattern:$0x75316420] }
  0x2e   :  { %166 = vst [vmem:[#allocation1] ss:$2 sm:$0xff] %v72_v36 }
  0x35   :  { %v167_v39 = vld.sshfl [vmem:[#allocation1] sm:$0xff pattern:$0x75316420]  ;;  %v168_v40 = vld.sshfl [vmem:[#allocation1 + $0x8] sm:$0xff pattern:$0x75316420] }
  0x36   :  { %v171_v41 = vsel %vm69_vm2, %v167_v39, 0.0  ;;  %v172_v42 = vsel %vm69_vm2, %v168_v40, 0.0 }
  0x37   :  { %v173_v43 = vadd.f32 %v172_v42, %v171_v41 }
  0x88   :  { %v80_v6 = vpop.permute.xlu0 %79 }
  0x90   :  { %v94_v9 = vpop.permute.xlu1 %93  ;;  %v82_v10 = vpop.permute.xlu0 %81 }
  0x91   :  { %v86_v11 = vsel %vm85_vm0, %v80_v6, %v82_v10  ;;  %v87_v12 = vsel %vm85_vm0, %v82_v10, %v80_v6 }
  0x92   :  { %v107_v15 = vadd.f32 %v103_v13, %v87_v12  ;;  %v108_v16 = vadd.f32 %v104_v14, %v86_v11 }
  0x98   :  { %v96_v17 = vpop.permute.xlu1 %95 }
  0x99   :  { %v98_v18 = vsel %vm97_vm1, %v94_v9, %v96_v17  ;;  %v99_v19 = vsel %vm97_vm1, %v96_v17, %v94_v9 }
  0x9a   :  { %v109_v20 = vadd.f32 %v107_v15, %v98_v18  ;;  %v110_v21 = vadd.f32 %v108_v16, %v99_v19  ;;  %v111_v22 = vsub.f32 %v87_v12, %v98_v18  ;;  %v112_v23 = vsub.f32 %v86_v11, %v99_v19 }
  0x9c   :  { %129 = vrot.lane.b32.xlu2 %v111_v22, %s334_s26  ;;  %115 = vrot.lane.b32.xlu1 %v110_v21, %s334_s26  ;;  %v136_v51 = vmul.f32 2.0, %v112_v23  ;;  %v135_v52 = vmul.f32 2.0, %v111_v22 }
  0x9d   :  { %113 = vrot.lane.b32.xlu0 %v109_v20, %s334_s26 }
  0xa4   :  { %131 = vrot.lane.b32.xlu2 %v112_v23, %s334_s26  ;;  %139 = vrot.lane.b32.xlu1 %v111_v22, %s335_s27 }
  0xa5   :  { %122 = vrot.lane.b32.xlu0 %v110_v21, %s335_s27 }
  0xac   :  { %120 = vrot.lane.b32.xlu2 %v109_v20, %s335_s27 }
  0xb4   :  { %141 = vrot.lane.b32.xlu2 %v112_v23, %s335_s27 }
  0xcf   :  { %174 = vadd.xlane.f32.xlu0 %v173_v43 }
  0xf6   :  { %v130_v44 = vpop.permute.xlu2 %129 }
  0xfe   :  { %v132_v45 = vpop.permute.xlu2 %131 }
  0xff   :  { %v133_v49 = vsel %vm117_vm3, %v130_v44, %v132_v45  ;;  %v134_v50 = vsel %vm117_vm3, %v132_v45, %v130_v44 }
 0x100   :  { %v137_v53 = vadd.f32 %v135_v52, %v134_v50  ;;  %v138_v54 = vadd.f32 %v136_v51, %v133_v49 }
 0x106   :  { %v121_v46 = vpop.permute.xlu2 %120 }
 0x10e   :  { %v116_v47 = vpop.permute.xlu1 %115  ;;  %v142_v55 = vpop.permute.xlu2 %141 }
 0x10f   :  { %v114_v48 = vpop.permute.xlu0 %113 }
 0x110   :  { %v118_v57 = vsel %vm117_vm3, %v114_v48, %v116_v47  ;;  %v119_v58 = vsel %vm117_vm3, %v116_v47, %v114_v48 }
 0x116   :  { %v140_v56 = vpop.permute.xlu1 %139 }
 0x117   :  { %v143_v59 = vsel %vm124_vm4, %v140_v56, %v142_v55  ;;  %v144_v60 = vsel %vm124_vm4, %v142_v55, %v140_v56  ;;  %v123_v61 = vpop.permute.xlu0 %122 }
 0x118   :  { %v145_v62 = vadd.f32 %v143_v59, %v137_v53  ;;  %v146_v63 = vadd.f32 %v144_v60, %v138_v54  ;;  %v125_v0 = vsel %vm124_vm4, %v121_v46, %v123_v61  ;;  %v126_v1 = vsel %vm124_vm4, %v123_v61, %v121_v46 }
 0x119   :  { %v127_v2 = vsub.f32 %v119_v58, %v125_v0  ;;  %v128_v3 = vsub.f32 %v118_v57, %v126_v1 }
 0x11a   :  { %v149_v4 = vmul.f32 %v145_v62, %v145_v62  ;;  %v150_v5 = vmul.f32 %v146_v63, %v146_v63 }
 0x11b   :  { %v147_v6 = vmul.f32 %v127_v2, %v127_v2  ;;  %v148_v7 = vmul.f32 %v128_v3, %v128_v3 }
 0x11d   :  { %v151_v9 = vadd.f32 %v149_v4, %v147_v6  ;;  %v152_v10 = vadd.f32 %v150_v5, %v148_v7 }
 0x11f   :  { %v159_v11 = vmul.f32 %v155_v37, %v151_v9  ;;  %v160_v12 = vmul.f32 %v156_v38, %v152_v10 }
 0x121   :  { %v161_v13 = vsel %vm69_vm2, %v159_v11, 0.0  ;;  %v162_v14 = vsel %vm69_vm2, %v160_v12, 0.0 }
 0x122   :  { %v163_v15 = vadd.f32 %v162_v14, %v161_v13 }
 0x124   :  { %164 = vadd.xlane.f32.xlu1 %v163_v15 }
 0x142   :  { %v175_v16 = vpop.xlane.xlu0 %174 }
 0x143   :  { %225 = vrcp.f32 %v175_v16  ;;  %vm182_vm5 = vweird.f32 %v175_v16  ;;  %v188_v21 = vand.u32 2147483648, %v175_v16  ;;  %v186_v23 = vand.u32 2147483647, %v175_v16 }
 0x145   :  { %v189_v24 = vor.u32 1.1754944e-38, %v188_v21  ;;  %vm187_vm8 = vcmp.eq.f32.partialorder %v186_v23, 8.507059e+37 }
 0x149   :  { %v226_v17 = vpop.eup %225 }
 0x14a   :  { %v178_v18 = vmul.f32 %v226_v17, %v175_v16  ;;  %vm183_vm6 = vweird.f32 %v226_v17 }
 0x14b   :  { %vm184_vm7 = vmor %vm182_vm5, %vm183_vm6 }
 0x14c   :  { %v179_v19 = vsub.f32 1.0, %v178_v18 }
 0x14e   :  { %v180_v20 = vmul.f32 %v226_v17, %v179_v19 }
 0x150   :  { %v181_v22 = vadd.f32 %v226_v17, %v180_v20 }
 0x152   :  { %v185_v25 = vsel %vm184_vm7, %v226_v17, %v181_v22 }
 0x153   :  { %v190_v28 = vsel %vm187_vm8, %v189_v24, %v185_v25 }
 0x197   :  { %v165_v26 = vpop.xlane.xlu1 %164 }
 0x198   :  { %v176_v27 = vmul.f32 65025.0, %v165_v26 }
 0x19a   :  { %v191_v29 = vmul.f32 %v190_v28, %v176_v27 }
 0x19c   :  { %v193_v30 = vperm.slane %v191_v29, %v366_v8 }
 0x19e   :  { %196 = vst.msk [vmem:[#allocation8] sm:$0x1] %vm195_vm9, %v193_v30 }
 0x19f   :  { %207 = dma.vmem_to_hbm [thread:$0]  %s203_s29, 16, %s205_s5, [#allocation4]  }
 0x1a0   :  { %327 = dma.done.wait [#allocation4], 16  }
 0x1a1   :  { %328 = vsyncadd [#allocation4], 4294967280 }
 0x1a2   :  { %212 = vsyncpa [#allocation3], 1 }
 0x1a3   :  { %213 = vsyncpa [#allocation6], 1 }
 0x1a4   :  { %214 = vsyncpa [#allocation4], 1 }

</bundles_post_ra>
